<compile_context>
chip_gen: v5e
topology: v5e:2x2
jax: 0.10.0
libtpu: 0.0.40
codegen_flags: <defaults>
</compile_context>

<pallas_src>
import jax
import jax.numpy as jnp
from jax import lax
from jax.experimental import pallas as pl
from jax.experimental.pallas import tpu as pltpu

EPS = 1e-5


def bn_relu_kernel(x_ref, gamma_ref, beta_ref, o_ref):
    # x_ref: (N, CT, HW) -- channels on sublanes, spatial on lanes.
    x = x_ref[...].astype(jnp.float32)
    inv_n = 1.0 / (x.shape[0] * x.shape[2])

    # One-pass statistics: sum and sum-of-squares (lane reduce -> XLU slot,
    # then a trivial reduce over the size-N leading axis).
    s = jnp.sum(x, axis=2, keepdims=True)            # (N, CT, 1)
    ss = jnp.sum(x * x, axis=2, keepdims=True)       # (N, CT, 1)
    s = jnp.sum(s, axis=0, keepdims=True)            # (1, CT, 1)
    ss = jnp.sum(ss, axis=0, keepdims=True)          # (1, CT, 1)

    mean = s * inv_n
    var = ss * inv_n - mean * mean                   # biased variance (training-mode BN)

    inv_std = lax.rsqrt(var + EPS)                   # EUP
    scale = inv_std * gamma_ref[...]                 # (1, CT, 1): folded gamma * inv_std
    shift = beta_ref[...] - mean * scale             # (1, CT, 1)

    y = x * scale + shift
    o_ref[...] = jnp.maximum(y, 0.0).astype(o_ref.dtype)


def _pick_channel_tile(c, max_tile=128):
    """Largest divisor of c that is a multiple of 8 and <= max_tile (else c)."""
    for cand in range(min(c, max_tile), 7, -1):
        if c % cand == 0 and cand % 8 == 0:
            return cand
    return c


def batchnorm_relu(x_nchw, gamma, beta):
    """Training-mode BatchNorm2d(eps=1e-5, affine=True) + ReLU.

    x_nchw: (N, C, H, W) float32; gamma/beta: (C,) float32.
    """
    N, C, H, W = x_nchw.shape
    HW = H * W

    # Zero-copy relayouts: no XLA transposes around the kernel.
    x3d = x_nchw.reshape(N, C, HW)
    gamma2d = gamma.reshape(C, 1)
    beta2d = beta.reshape(C, 1)

    ct = _pick_channel_tile(C)                       # 112 for C=784 -> grid of 7
    grid = (C // ct,)

    cost = pl.CostEstimate(
        flops=7 * N * C * HW,
        transcendentals=C,                           # one rsqrt per channel
        bytes_accessed=2 * N * C * HW * 4 + 2 * C * 4,
    )

    out3d = pl.pallas_call(
        bn_relu_kernel,
        out_shape=jax.ShapeDtypeStruct((N, C, HW), x_nchw.dtype),
        grid_spec=pl.GridSpec(
            grid=grid,
            in_specs=[
                pl.BlockSpec((N, ct, HW), lambda c: (0, c, 0)),
                pl.BlockSpec((ct, 1), lambda c: (c, 0)),
                pl.BlockSpec((ct, 1), lambda c: (c, 0)),
            ],
            out_specs=pl.BlockSpec((N, ct, HW), lambda c: (0, c, 0)),
        ),
        compiler_params=pltpu.CompilerParams(
            dimension_semantics=("parallel",),
        ),
        cost_estimate=cost,
    )(x3d, gamma2d, beta2d)

    return out3d.reshape(N, C, H, W)


if __name__ == "__main__":
    # Shapes implied by the module: x223 = randn([1, 784, 7, 7]); BatchNorm2d(784)
    N, C, H, W = 1, 784, 7, 7

    key = jax.random.PRNGKey(0)
    kx, kg, kb = jax.random.split(key, 3)

    x = jax.random.normal(kx, (N, C, H, W), dtype=jnp.float32)
    # deterministic, non-trivial affine parameters (PyTorch default is
    # gamma=1, beta=0; randomized here to exercise the affine path)
    gamma = 1.0 + 0.1 * jax.random.normal(kg, (C,), dtype=jnp.float32)
    beta = 0.1 * jax.random.normal(kb, (C,), dtype=jnp.float32)

    out = batchnorm_relu(x, gamma, beta)
    jax.block_until_ready(out)

    # pure-JAX reference (two-pass stats) of the same training-mode BN + ReLU
    mean = jnp.mean(x, axis=(0, 2, 3), keepdims=True)
    var = jnp.mean((x - mean) ** 2, axis=(0, 2, 3), keepdims=True)
    ref = (x - mean) * lax.rsqrt(var + EPS)
    ref = ref * gamma.reshape(1, C, 1, 1) + beta.reshape(1, C, 1, 1)
    ref = jnp.maximum(ref, 0.0)
    assert jnp.allclose(out, ref, atol=1e-4, rtol=1e-5), "mismatch vs reference"

    print("KERNEL_OK")
</pallas_src>

<mosaic_0001>
module attributes {stable_mosaic.version = 11 : i64} {
  func.func @bn_relu_kernel(%arg0: i32, %arg1: memref<1x112x49xf32, #tpu.memory_space<vmem>>, %arg2: memref<112x1xf32, #tpu.memory_space<vmem>>, %arg3: memref<112x1xf32, #tpu.memory_space<vmem>>, %arg4: memref<1x112x49xf32, #tpu.memory_space<vmem>>) attributes {dimension_semantics = [#tpu.dimension_semantics<parallel>], iteration_bounds = array<i64: 7>, scalar_prefetch = 0 : i64, scratch_operands = 0 : i64, tpu.core_type = #tpu.core_type<tc>, window_params = [{transform_indices = @transform_0, window_bounds = array<i64: 1, 112, 49>}, {transform_indices = @transform_1, window_bounds = array<i64: 112, 1>}, {transform_indices = @transform_2, window_bounds = array<i64: 112, 1>}, {transform_indices = @transform_3, window_bounds = array<i64: 1, 112, 49>}]} {
    %c0 = arith.constant 0 : index
    %c0_0 = arith.constant 0 : index
    %c0_1 = arith.constant 0 : index
    %0 = vector.load %arg1[%c0, %c0_0, %c0_1] : memref<1x112x49xf32, #tpu.memory_space<vmem>>, vector<1x112x49xf32>
    %cst = arith.constant dense<0.000000e+00> : vector<1x112xf32>
    %1 = vector.multi_reduction <add>, %0, %cst [2] : vector<1x112x49xf32> to vector<1x112xf32>
    %2 = vector.shape_cast %1 : vector<1x112xf32> to vector<1x112x1xf32>
    %3 = arith.mulf %0, %0 : vector<1x112x49xf32>
    %cst_2 = arith.constant dense<0.000000e+00> : vector<1x112xf32>
    %4 = vector.multi_reduction <add>, %3, %cst_2 [2] : vector<1x112x49xf32> to vector<1x112xf32>
    %5 = vector.shape_cast %4 : vector<1x112xf32> to vector<1x112x1xf32>
    %cst_3 = arith.constant dense<0.000000e+00> : vector<112x1xf32>
    %6 = vector.multi_reduction <add>, %2, %cst_3 [0] : vector<1x112x1xf32> to vector<112x1xf32>
    %7 = vector.shape_cast %6 : vector<112x1xf32> to vector<1x112x1xf32>
    %cst_4 = arith.constant dense<0.000000e+00> : vector<112x1xf32>
    %8 = vector.multi_reduction <add>, %5, %cst_4 [0] : vector<1x112x1xf32> to vector<112x1xf32>
    %9 = vector.shape_cast %8 : vector<112x1xf32> to vector<1x112x1xf32>
    %cst_5 = arith.constant 0.0204081628 : f32
    %10 = vector.broadcast %cst_5 : f32 to vector<1x112x1xf32>
    %11 = arith.mulf %7, %10 : vector<1x112x1xf32>
    %cst_6 = arith.constant 0.0204081628 : f32
    %12 = vector.broadcast %cst_6 : f32 to vector<1x112x1xf32>
    %13 = arith.mulf %9, %12 : vector<1x112x1xf32>
    %14 = arith.mulf %11, %11 : vector<1x112x1xf32>
    %15 = arith.subf %13, %14 : vector<1x112x1xf32>
    %cst_7 = arith.constant 9.99999974E-6 : f32
    %16 = vector.broadcast %cst_7 : f32 to vector<1x112x1xf32>
    %17 = arith.addf %15, %16 : vector<1x112x1xf32>
    %18 = math.rsqrt %17 : vector<1x112x1xf32>
    %c0_8 = arith.constant 0 : index
    %c0_9 = arith.constant 0 : index
    %19 = vector.load %arg2[%c0_8, %c0_9] : memref<112x1xf32, #tpu.memory_space<vmem>>, vector<112x1xf32>
    %20 = vector.shape_cast %19 : vector<112x1xf32> to vector<1x112x1xf32>
    %21 = arith.mulf %18, %20 : vector<1x112x1xf32>
    %c0_10 = arith.constant 0 : index
    %c0_11 = arith.constant 0 : index
    %22 = vector.load %arg3[%c0_10, %c0_11] : memref<112x1xf32, #tpu.memory_space<vmem>>, vector<112x1xf32>
    %23 = arith.mulf %11, %21 : vector<1x112x1xf32>
    %24 = vector.shape_cast %22 : vector<112x1xf32> to vector<1x112x1xf32>
    %25 = arith.subf %24, %23 : vector<1x112x1xf32>
    %26 = vector.broadcast %21 : vector<1x112x1xf32> to vector<1x112x49xf32>
    %27 = arith.mulf %0, %26 : vector<1x112x49xf32>
    %28 = vector.broadcast %25 : vector<1x112x1xf32> to vector<1x112x49xf32>
    %29 = arith.addf %27, %28 : vector<1x112x49xf32>
    %cst_12 = arith.constant 0.000000e+00 : f32
    %30 = vector.broadcast %cst_12 : f32 to vector<1x112x49xf32>
    %31 = arith.maximumf %29, %30 : vector<1x112x49xf32>
    %c0_13 = arith.constant 0 : index
    %c0_14 = arith.constant 0 : index
    %c0_15 = arith.constant 0 : index
    %32 = vector.load %arg4[%c0_13, %c0_14, %c0_15] : memref<1x112x49xf32, #tpu.memory_space<vmem>>, vector<1x112x49xf32>
    tpu.vector_store %arg4[%c0_13, %c0_14, %c0_15], %31 {strides = array<i32>} : memref<1x112x49xf32, #tpu.memory_space<vmem>>, vector<1x112x49xf32>,
    return
  }
  func.func @transform_0(%arg0: i32) -> (i32, i32, i32) {
    %c0_i32 = arith.constant 0 : i32
    %c0_i32_0 = arith.constant 0 : i32
    %c0_i32_1 = arith.constant 0 : i32
    return %c0_i32, %arg0, %c0_i32_0 : i32, i32, i32
  }
  func.func @transform_1(%arg0: i32) -> (i32, i32) {
    %c0_i32 = arith.constant 0 : i32
    %c0_i32_0 = arith.constant 0 : i32
    return %arg0, %c0_i32 : i32, i32
  }
  func.func @transform_2(%arg0: i32) -> (i32, i32) {
    %c0_i32 = arith.constant 0 : i32
    %c0_i32_0 = arith.constant 0 : i32
    return %arg0, %c0_i32 : i32, i32
  }
  func.func @transform_3(%arg0: i32) -> (i32, i32, i32) {
    %c0_i32 = arith.constant 0 : i32
    %c0_i32_0 = arith.constant 0 : i32
    %c0_i32_1 = arith.constant 0 : i32
    return %c0_i32, %arg0, %c0_i32_0 : i32, i32, i32
  }
}

</mosaic_0001>

<bundles_post_ra>
// kernel: tpu_custom_call.1
= control target key start
LH: loop header
LB: loop body
LE: loop exit
PB: predicated region body
PF: predicated region fallthrough
CT: control target
= control target key end

     0   :  { %s995_s12 = smov 0   ;;  %s1541_s0 = inlined_call_operand.vmem [shape: f32[1,784,49], index: 0, kind: input, shape index: {}]   ;;  %s1542_s1 = inlined_call_operand.vmem [shape: f32[784,1], index: 1, kind: input, shape index: {}]   ;;  %s1543_s2 = inlined_call_operand.vmem [shape: f32[784,1], index: 2, kind: input, shape index: {}]   ;;  %s1544_s3 = inlined_call_operand.vmem [shape: f32[1,784,49], index: 3, kind: output, shape index: {}]  }
   0x1 LB: > { %s915_s13 = sadd.s32 4294967295, %s972_s12   ;;  %p919_p0 = scmp.ge.s32.totalorder %s972_s12, 1  ;;  %s972_s12 = sphi %s995_s12, %s13_s12  }
   0x2   : > { %p160_p1 = scmp.lt.s32.totalorder %s972_s12, 8 }
   0x4   : > { %p161_p2 = pnand %p919_p0, %p160_p1 }
   0x6   : > { %164 = sbr.rel (%p161_p2) target bundleno = 397 (0x18d), region = 32 }
   0xb   : > { %s194_s14 = smul.u32 14, %s915_s13  ;;  %vm232_vm0 = vcmask 400384  }
   0xd   : > { %p195_p3 = scmp.lt.s32.totalorder %s194_s14, 97 }
   0xf   : > { %s1569_s14 = smov (!%p195_p3, %s194_s14), 97 }
  0x10   : > { %s1003_s15 = sshll.u32 %s1569_s14, 3 }
  0x11   : > { %s1009_s18 = scalar_lea.vmem %s1541_s0, %s1003_s15  ;;  %s1199_s21 = scalar_lea.vmem %s1542_s1, %s1003_s15 }
  0x12   : > { %v1012_v0 = vld [vmem:[%s1009_s18 + $0x20] sm:$0xff]  ;;  %v1015_v1 = vld [vmem:[%s1009_s18 + $0x10] sm:$0xff]  ;;  %v1027_v6 = vld [vmem:[%s1009_s18 + $0x28] sm:$0xff]  ;;  %s1430_s24 = scalar_lea.vmem %s1543_s2, %s1003_s15  ;;  %s1494_s27 = scalar_lea.vmem %s1544_s3, %s1003_s15 }
  0x13   : > { %v1018_v2 = vld [vmem:[%s1009_s18] sm:$0xff]  ;;  %v245_v3 = vsel %vm232_vm0, %v1012_v0, 0.0  ;;  %v239_v4 = vsel %vm232_vm0, %v1015_v1, 0.0  ;;  %v1030_v7 = vld [vmem:[%s1009_s18 + $0x18] sm:$0xff]  ;;  %v1033_v8 = vld [vmem:[%s1009_s18 + $0x8] sm:$0xff]  ;;  %v248_v9 = vsel %vm232_vm0, %v1027_v6, 0.0  ;;  %v277_v30 = vmul.f32 %v1015_v1, %v1015_v1 }
  0x14   : > { %v233_v5 = vsel %vm232_vm0, %v1018_v2, 0.0  ;;  %246 = vadd.xlane.f32.xlu2 %v245_v3  ;;  %240 = vadd.xlane.f32.xlu1 %v239_v4  ;;  %v242_v10 = vsel %vm232_vm0, %v1030_v7, 0.0  ;;  %v236_v11 = vsel %vm232_vm0, %v1033_v8, 0.0  ;;  %v1042_v12 = vld [vmem:[%s1009_s18 + $0x40] sm:$0xff]  ;;  %v1045_v13 = vld [vmem:[%s1009_s18 + $0x38] sm:$0xff]  ;;  %v1048_v14 = vld [vmem:[%s1009_s18 + $0x30] sm:$0xff]  ;;  %v275_v24 = vmul.f32 %v1018_v2, %v1018_v2 }
  0x15   : > { %234 = vadd.xlane.f32.xlu0 %v233_v5  ;;  %1550 = vst [vmem:[#allocation2_spill] sm:$0xff] %v1048_v14  ;;  %v257_v15 = vsel %vm232_vm0, %v1042_v12, 0.0  ;;  %v254_v16 = vsel %vm232_vm0, %v1045_v13, 0.0  ;;  %v251_v17 = vsel %vm232_vm0, %v1048_v14, 0.0  ;;  %v1057_v18 = vld [vmem:[%s1009_s18 + $0x58] sm:$0xff]  ;;  %v1060_v19 = vld [vmem:[%s1009_s18 + $0x50] sm:$0xff]  ;;  %v278_v31 = vmul.f32 %v1030_v7, %v1030_v7 }
  0x16   : > { %1551 = vst [vmem:[#allocation3_spill] sm:$0xff] %v1060_v19  ;;  %v1063_v20 = vld [vmem:[%s1009_s18 + $0x48] sm:$0xff]  ;;  %v266_v21 = vsel %vm232_vm0, %v1057_v18, 0.0  ;;  %v263_v22 = vsel %vm232_vm0, %v1060_v19, 0.0  ;;  %v1077_v26 = vld [vmem:[%s1009_s18 + $0x60] sm:$0xff]  ;;  %v289_v28 = vsel %vm232_vm0, %v275_v24, 0.0  ;;  %v276_v32 = vmul.f32 %v1033_v8, %v1033_v8 }
  0x17   : > { %1552 = vst [vmem:[#allocation4_spill] sm:$0xff] %v1063_v20  ;;  %v260_v23 = vsel %vm232_vm0, %v1063_v20, 0.0  ;;  %v1074_v25 = vld [vmem:[%s1009_s18 + $0x68] sm:$0xff]  ;;  %v269_v29 = vsel %vm232_vm0, %v1077_v26, 0.0  ;;  %v295_v33 = vsel %vm232_vm0, %v277_v30, 0.0  ;;  %v298_v34 = vsel %vm232_vm0, %v278_v31, 0.0 }
  0x18   : > { %1553 = vst [vmem:[#allocation5_spill] sm:$0xff] %v1074_v25  ;;  %v272_v27 = vsel %vm232_vm0, %v1074_v25, 0.0  ;;  %v292_v35 = vsel %vm232_vm0, %v276_v32, 0.0  ;;  %v280_v36 = vmul.f32 %v1027_v6, %v1027_v6  ;;  %v281_v37 = vmul.f32 %v1048_v14, %v1048_v14 }
  0x19   : > { %1554 = vst [vmem:[#allocation6_spill] sm:$0xff] %v1077_v26  ;;  %v279_v38 = vmul.f32 %v1012_v0, %v1012_v0  ;;  %v283_v42 = vmul.f32 %v1042_v12, %v1042_v12  ;;  %v284_v43 = vmul.f32 %v1063_v20, %v1063_v20  ;;  %v282_v44 = vmul.f32 %v1045_v13, %v1045_v13 }
  0x1a   : > { %v304_v39 = vsel %vm232_vm0, %v280_v36, 0.0  ;;  %v307_v40 = vsel %vm232_vm0, %v281_v37, 0.0  ;;  %v286_v48 = vmul.f32 %v1057_v18, %v1057_v18  ;;  %v287_v49 = vmul.f32 %v1077_v26, %v1077_v26 }
  0x1b   : > { %v301_v41 = vsel %vm232_vm0, %v279_v38, 0.0  ;;  %v313_v45 = vsel %vm232_vm0, %v283_v42, 0.0  ;;  %v316_v46 = vsel %vm232_vm0, %v284_v43, 0.0  ;;  %v310_v47 = vsel %vm232_vm0, %v282_v44, 0.0 }
  0x1c   : > { %249 = vadd.xlane.f32.xlu2 %v248_v9  ;;  %243 = vadd.xlane.f32.xlu1 %v242_v10  ;;  %v285_v50 = vmul.f32 %v1060_v19, %v1060_v19  ;;  %v322_v51 = vsel %vm232_vm0, %v286_v48, 0.0  ;;  %v325_v52 = vsel %vm232_vm0, %v287_v49, 0.0  ;;  %v288_v54 = vmul.f32 %v1074_v25, %v1074_v25 }
  0x1d   : > { %237 = vadd.xlane.f32.xlu0 %v236_v11  ;;  %v974_v10 = vmov 0  }
  0x1e   : > { %v319_v53 = vsel %vm232_vm0, %v285_v50, 0.0  ;;  %v328_v55 = vsel %vm232_vm0, %v288_v54, 0.0  ;;  %935 = vset.pattern.permute.xlu1 %v974_v10  ;;  %937 = vset.pattern.permute.xlu0 %v974_v10 }
  0x1f   : > { %936 = vset.pattern.permute.xlu2 %v974_v10 }
  0x24   : > { %258 = vadd.xlane.f32.xlu2 %v257_v15  ;;  %255 = vadd.xlane.f32.xlu1 %v254_v16 }
  0x25   : > { %252 = vadd.xlane.f32.xlu0 %v251_v17 }
  0x2c   : > { %267 = vadd.xlane.f32.xlu2 %v266_v21  ;;  %264 = vadd.xlane.f32.xlu1 %v263_v22 }
  0x2d   : > { %261 = vadd.xlane.f32.xlu0 %v260_v23 }
  0x34   : > { %273 = vadd.xlane.f32.xlu1 %v272_v27  ;;  %290 = vadd.xlane.f32.xlu2 %v289_v28 }
  0x35   : > { %270 = vadd.xlane.f32.xlu0 %v269_v29 }
  0x3c   : > { %296 = vadd.xlane.f32.xlu1 %v295_v33  ;;  %299 = vadd.xlane.f32.xlu2 %v298_v34 }
  0x3d   : > { %293 = vadd.xlane.f32.xlu0 %v292_v35 }
  0x44   : > { %305 = vadd.xlane.f32.xlu1 %v304_v39  ;;  %308 = vadd.xlane.f32.xlu2 %v307_v40 }
  0x45   : > { %302 = vadd.xlane.f32.xlu0 %v301_v41 }
  0x4c   : > { %314 = vadd.xlane.f32.xlu1 %v313_v45  ;;  %317 = vadd.xlane.f32.xlu2 %v316_v46 }
  0x4d   : > { %311 = vadd.xlane.f32.xlu0 %v310_v47 }
  0x54   : > { %323 = vadd.xlane.f32.xlu1 %v322_v51  ;;  %326 = vadd.xlane.f32.xlu2 %v325_v52 }
  0x55   : > { %320 = vadd.xlane.f32.xlu0 %v319_v53 }
  0x5d   : > { %329 = vadd.xlane.f32.xlu0 %v328_v55 }
  0x87   : > { %v247_v56 = vpop.xlane.xlu2 %246  ;;  %v241_v57 = vpop.xlane.xlu1 %240 }
  0x88   : > { %v235_v58 = vpop.xlane.xlu0 %234  ;;  %v1133_v24 = vmul.f32 0.020408163, %v241_v57  ;;  %v1158_v47 = vmul.f32 0.020408163, %v247_v56 }
  0x89   : > { %v1125_v11 = vmul.f32 0.020408163, %v235_v58 }
  0x8a   : > { %v389_v32 = vmul.f32 %v1133_v24, %v1133_v24 }
  0x8b   : > { %v387_v17 = vmul.f32 %v1125_v11, %v1125_v11 }
  0x8f   : > { %v250_v59 = vpop.xlane.xlu2 %249  ;;  %v244_v60 = vpop.xlane.xlu1 %243 }
  0x90   : > { %v238_v61 = vpop.xlane.xlu0 %237  ;;  %v1135_v27 = vmul.f32 0.020408163, %v244_v60  ;;  %v1148_v39 = vmul.f32 0.020408163, %v250_v59  ;;  %v391_v60 = vmul.f32 %v1158_v47, %v1158_v47 }
  0x91   : > { %v1139_v29 = vmul.f32 0.020408163, %v238_v61 }
  0x92   : > { %v390_v33 = vmul.f32 %v1135_v27, %v1135_v27  ;;  %v392_v50 = vmul.f32 %v1148_v39, %v1148_v39 }
  0x93   : > { %v388_v37 = vmul.f32 %v1139_v29, %v1139_v29 }
  0x97   : > { %v259_v62 = vpop.xlane.xlu2 %258  ;;  %v256_v63 = vpop.xlane.xlu1 %255 }
  0x98   : > { %v253_v3 = vpop.xlane.xlu0 %252  ;;  %v1167_v51 = vmul.f32 0.020408163, %v259_v62  ;;  %v1169_v52 = vmul.f32 0.020408163, %v256_v63 }
  0x99   : > { %v1152_v44 = vmul.f32 0.020408163, %v253_v3 }
  0x9b   : > { %v393_v56 = vmul.f32 %v1152_v44, %v1152_v44 }
  0x9f   : > { %v268_v4 = vpop.xlane.xlu2 %267  ;;  %v1123_v5 = vpop.xlane.xlu1 %264 }
  0xa0   : > { %v262_v9 = vpop.xlane.xlu0 %261  ;;  %v1178_v63 = vmul.f32 0.020408163, %v268_v4 }
  0xa1   : > { %v1180_v3 = vmul.f32 0.020408163, %v262_v9 }
  0xa7   : > { %v1127_v15 = vpop.xlane.xlu1 %273  ;;  %v291_v16 = vpop.xlane.xlu2 %290 }
  0xa8   : > { %v373_v21 = vmul.f32 0.020408163, %v291_v16  ;;  %v1131_v22 = vpop.xlane.xlu0 %270 }
  0xaa   : > { %v401_v23 = vsub.f32 %v373_v21, %v387_v17  ;;  %v395_v17 = vmul.f32 %v1167_v51, %v1167_v51 }
  0xac   : > { %v1137_v28 = vadd.f32 1e-05, %v401_v23 }
  0xae   : > { %938 = vrsqrt.f32 %v1137_v28  ;;  %vm435_vm2 = vweird.f32 %v1137_v28 }
  0xaf   : > { %v297_v30 = vpop.xlane.xlu1 %296  ;;  %v300_v31 = vpop.xlane.xlu2 %299 }
  0xb0   : > { %v375_v34 = vmul.f32 0.020408163, %v297_v30  ;;  %v376_v35 = vmul.f32 0.020408163, %v300_v31  ;;  %v294_v36 = vpop.xlane.xlu0 %293  ;;  %v394_v31 = vmul.f32 %v1169_v52, %v1169_v52 }
  0xb1   : > { %v374_v38 = vmul.f32 0.020408163, %v294_v36 }
  0xb2   : > { %v403_v40 = vsub.f32 %v375_v34, %v389_v32  ;;  %v404_v41 = vsub.f32 %v376_v35, %v390_v33  ;;  %v1189_v32 = vmul.f32 0.020408163, %v1123_v5 }
  0xb3   : > { %v402_v42 = vsub.f32 %v374_v38, %v388_v37  ;;  %v1213_v37 = vmul.f32 %v1178_v63, %v1178_v63  ;;  %v396_v38 = vmul.f32 %v1180_v3, %v1180_v3 }
  0xb4   : > { %v1150_v43 = vpop.eup %938  ;;  %v1154_v45 = vadd.f32 1e-05, %v403_v40  ;;  %v1156_v46 = vadd.f32 1e-05, %v404_v41 }
  0xb5   : > { %v430_v48 = vmul.f32 %v1150_v43, %v1137_v28  ;;  %v1162_v49 = vadd.f32 1e-05, %v402_v42  ;;  %vm436_vm1 = vweird.f32 %v1150_v43 }
  0xb6   : > { %940 = vrsqrt.f32 %v1154_v45  ;;  %vm437_vm3 = vmor %vm435_vm2, %vm436_vm1  ;;  %vm455_vm4 = vweird.f32 %v1154_v45  ;;  %vm465_vm11 = vweird.f32 %v1156_v46 }
  0xb7   : > { %v431_v53 = vmul.f32 %v1150_v43, %v430_v48  ;;  %942 = vrsqrt.f32 %v1156_v46  ;;  %v306_v54 = vpop.xlane.xlu1 %305  ;;  %v309_v55 = vpop.xlane.xlu2 %308  ;;  %vm445_vm6 = vweird.f32 %v1162_v49 }
  0xb8   : > { %944 = vrsqrt.f32 %v1162_v49  ;;  %v378_v57 = vmul.f32 0.020408163, %v306_v54  ;;  %v379_v58 = vmul.f32 0.020408163, %v309_v55  ;;  %v303_v59 = vpop.xlane.xlu0 %302  ;;  %v1227_v54 = vmul.f32 0.020408163, %v1131_v22 }
  0xb9   : > { %v432_v61 = vmul.f32 0.5, %v431_v53  ;;  %v377_v62 = vmul.f32 0.020408163, %v303_v59  ;;  %v569_v53 = vld [vmem:[%s1199_s21] sm:$0xff] }
  0xba   : > { %v406_v10 = vsub.f32 %v378_v57, %v392_v50  ;;  %v407_v16 = vsub.f32 %v379_v58, %v393_v56 }
  0xbb   : > { %v433_v21 = vsub.f32 1.5, %v432_v61  ;;  %v405_v23 = vsub.f32 %v377_v62, %v391_v60 }
  0xbc   : > { %v1184_v30 = vpop.eup %940  ;;  %v1191_v33 = vadd.f32 1e-05, %v406_v10  ;;  %v1193_v4 = vadd.f32 1e-05, %v407_v16  ;;  %v397_v16 = vmul.f32 %v1189_v32, %v1189_v32 }
  0xbd   : > { %v1201_v9 = vpop.eup %942  ;;  %v450_v34 = vmul.f32 %v1184_v30, %v1154_v45  ;;  %v1205_v35 = vadd.f32 1e-05, %v405_v23  ;;  %v434_v5 = vmul.f32 %v1150_v43, %v433_v21  ;;  %vm456_vm5 = vweird.f32 %v1184_v30 }
  0xbe   : > { %v1209_v36 = vpop.eup %944  ;;  %v460_v40 = vmul.f32 %v1201_v9, %v1156_v46  ;;  %946 = vrsqrt.f32 %v1191_v33  ;;  %vm457_vm7 = vmor %vm455_vm4, %vm456_vm5  ;;  %vm466_vm10 = vweird.f32 %v1201_v9  ;;  %v573_v46 = vld [vmem:[%s1199_s21 + $0x20] sm:$0xff]  ;;  %vm495_vm4 = vweird.f32 %v1193_v4 }
  0xbf   : > { %v451_v41 = vmul.f32 %v1184_v30, %v450_v34  ;;  %v440_v42 = vmul.f32 %v1209_v36, %v1162_v49  ;;  %948 = vrsqrt.f32 %v1193_v4  ;;  %v315_v48 = vpop.xlane.xlu1 %314  ;;  %v318_v50 = vpop.xlane.xlu2 %317  ;;  %v438_v60 = vsel %vm437_vm3, %v1150_v43, %v434_v5  ;;  %vm1329_vm13 = vmor %vm465_vm11, %vm466_vm10 }
  0xc0   : > { %950 = vrsqrt.f32 %v1205_v35  ;;  %v381_v55 = vmul.f32 0.020408163, %v315_v48  ;;  %v382_v56 = vmul.f32 0.020408163, %v318_v50  ;;  %v312_v57 = vpop.xlane.xlu0 %311  ;;  %v461_v61 = vmul.f32 %v1201_v9, %v460_v40 }
  0xc1   : > { %v452_v28 = vmul.f32 0.5, %v451_v41  ;;  %v441_v58 = vmul.f32 %v1209_v36, %v440_v42  ;;  %v380_v59 = vmul.f32 0.020408163, %v312_v57  ;;  %v1235_v22 = vmul.f32 %v569_v53, %v438_v60 }
  0xc2   : > { %v409_v62 = vsub.f32 %v381_v55, %v395_v17  ;;  %v410_v10 = vsub.f32 %v382_v56, %v396_v38  ;;  %v1242_v41 = vmul.f32 0.020408163, %v1127_v15  ;;  %v399_v43 = vmul.f32 %v1227_v54, %v1227_v54 }
  0xc3   : > { %v453_v21 = vsub.f32 1.5, %v452_v28  ;;  %v442_v23 = vmul.f32 0.5, %v441_v58  ;;  %v408_v34 = vsub.f32 %v380_v59, %v394_v31  ;;  %641 = vperm.xlu1 %935, %v1235_v22   ;;  %v462_v42 = vmul.f32 0.5, %v461_v61  ;;  %v571_v58 = vld [vmem:[%s1199_s21 + $0x10] sm:$0xff] }
  0xc4   : > { %v1239_v48 = vpop.eup %946  ;;  %v1246_v5 = vadd.f32 1e-05, %v409_v62  ;;  %v1248_v17 = vadd.f32 1e-05, %v410_v10  ;;  %vm446_vm8 = vweird.f32 %v1209_v36  ;;  %v400_v49 = vmul.f32 %v1242_v41, %v1242_v41 }
  0xc5   : > { %v1251_v38 = vpop.eup %948  ;;  %v1254_v31 = vadd.f32 1e-05, %v408_v34  ;;  %v454_v40 = vmul.f32 %v1184_v30, %v453_v21  ;;  %v443_v53 = vsub.f32 1.5, %v442_v23  ;;  %v480_v55 = vmul.f32 %v1239_v48, %v1191_v33  ;;  %vm1295_vm9 = vmor %vm445_vm6, %vm446_vm8 }
  0xc6   : > { %v1258_v15 = vpop.eup %950  ;;  %v490_v50 = vmul.f32 %v1251_v38, %v1193_v4  ;;  %952 = vrsqrt.f32 %v1246_v5  ;;  %v463_v34 = vsub.f32 1.5, %v462_v42  ;;  %v570_v42 = vld [vmem:[%s1199_s21 + $0x8] sm:$0xff]  ;;  %vm475_vm12 = vweird.f32 %v1205_v35 }
  0xc7   : > { %v470_v56 = vmul.f32 %v1258_v15, %v1205_v35  ;;  %954 = vrsqrt.f32 %v1248_v17  ;;  %v324_v57 = vpop.xlane.xlu1 %323  ;;  %v327_v28 = vpop.xlane.xlu2 %326  ;;  %v458_v23 = vsel %vm457_vm7, %v1184_v30, %v454_v40  ;;  %v481_v20 = vmul.f32 %v1239_v48, %v480_v55 }
  0xc8   : > { %956 = vrsqrt.f32 %v1254_v31  ;;  %v384_v59 = vmul.f32 0.020408163, %v324_v57  ;;  %v385_v60 = vmul.f32 0.020408163, %v327_v28  ;;  %v321_v61 = vpop.xlane.xlu0 %320  ;;  %v491_v62 = vmul.f32 %v1251_v38, %v490_v50 }
  0xc9   : > { %v471_v10 = vmul.f32 %v1258_v15, %v470_v56  ;;  %v383_v21 = vmul.f32 0.020408163, %v321_v61  ;;  %v1280_v28 = vmul.f32 %v571_v58, %v458_v23  ;;  %v444_v14 = vmul.f32 %v1209_v36, %v443_v53 }
  0xca   : > { %v412_v26 = vsub.f32 %v384_v59, %v1213_v37  ;;  %v413_v57 = vsub.f32 %v385_v60, %v399_v43  ;;  %v482_v59 = vmul.f32 0.5, %v481_v20  ;;  %vm476_vm14 = vweird.f32 %v1258_v15 }
  0xcb   : > { %v472_v45 = vmul.f32 0.5, %v471_v10  ;;  %v411_v25 = vsub.f32 %v383_v21, %v397_v16  ;;  %651 = vperm.xlu0 %937, %v1280_v28   ;;  %v492_v16 = vmul.f32 0.5, %v491_v62  ;;  %v448_v40 = vsel %vm1295_vm9, %v1209_v36, %v444_v14  ;;  %vm477_vm1 = vmor %vm475_vm12, %vm476_vm14 }
  0xcc   : > { %v1284_v19 = vpop.eup %952  ;;  %v1286_v50 = vadd.f32 1e-05, %v412_v26  ;;  %v1288_v56 = vadd.f32 1e-05, %v413_v57  ;;  %v1322_v60 = vmul.f32 %v570_v42, %v448_v40  ;;  %v483_v57 = vsub.f32 1.5, %v482_v59  ;;  %v572_v40 = vld [vmem:[%s1199_s21 + $0x18] sm:$0xff] }
  0xcd   : > { %v1299_v37 = vpop.eup %954  ;;  %v510_v43 = vmul.f32 %v1284_v19, %v1246_v5  ;;  %v1303_v26 = vadd.f32 1e-05, %v411_v25  ;;  %v473_v55 = vsub.f32 1.5, %v472_v45  ;;  %v464_v25 = vmul.f32 %v1201_v9, %v463_v34 }
  0xce   : > { %v1309_v53 = vpop.eup %956  ;;  %v520_v58 = vmul.f32 %v1299_v37, %v1248_v17  ;;  %958 = vrsqrt.f32 %v1286_v50  ;;  %v493_v62 = vsub.f32 1.5, %v492_v16  ;;  %646 = vperm.xlu2 %936, %v1322_v60   ;;  %vm525_vm15 = vweird.f32 %v1248_v17 }
  0xcf   : > { %960 = vrsqrt.f32 %v1288_v56  ;;  %v511_v14 = vmul.f32 %v1284_v19, %v510_v43  ;;  %v500_v20 = vmul.f32 %v1309_v53, %v1254_v31  ;;  %v474_v34 = vmul.f32 %v1258_v15, %v473_v55 }
  0xd0   : > { %v521_v36 = vmul.f32 %v1299_v37, %v520_v58  ;;  %962 = vrsqrt.f32 %v1303_v26  ;;  %v330_v61 = vpop.xlane.xlu0 %329  ;;  %v468_v35 = vsel %vm1329_vm13, %v1201_v9, %v464_v25  ;;  %vm526_vm2 = vweird.f32 %v1299_v37 }
  0xd1   : > { %v386_v10 = vmul.f32 0.020408163, %v330_v61  ;;  %v512_v16 = vmul.f32 0.5, %v511_v14  ;;  %v478_v42 = vsel %vm477_vm1, %v1258_v15, %v474_v34  ;;  %v501_v58 = vmul.f32 %v1309_v53, %v500_v20  ;;  %v578_v61 = vld [vmem:[%s1199_s21 + $0x48] sm:$0xff]  ;;  %vm527_vm5 = vmor %vm525_vm15, %vm526_vm2 }
  0xd2   : > { %v522_v21 = vmul.f32 0.5, %v521_v36  ;;  %v494_v9 = vmul.f32 %v1251_v38, %v493_v62  ;;  %vm496_vm3 = vweird.f32 %v1251_v38  ;;  %v1360_v20 = vmul.f32 %v572_v40, %v468_v35 }
  0xd3   : > { %v414_v45 = vsub.f32 %v386_v10, %v400_v49  ;;  %v1348_v49 = vmul.f32 %v573_v46, %v478_v42  ;;  %v502_v23 = vmul.f32 0.5, %v501_v58  ;;  %v484_v34 = vmul.f32 %v1239_v48, %v483_v57  ;;  %vm1375_vm7 = vmor %vm495_vm4, %vm496_vm3  ;;  %v574_v58 = vld [vmem:[%s1199_s21 + $0x28] sm:$0xff]  ;;  %v577_v46 = vld [vmem:[%s1199_s21 + $0x40] sm:$0xff] }
  0xd4   : > { %v1340_v30 = vpop.eup %958  ;;  %v523_v43 = vsub.f32 1.5, %v522_v21  ;;  %vm486_vm6 = vweird.f32 %v1239_v48  ;;  %v513_v17 = vsub.f32 1.5, %v512_v16  ;;  %vm485_vm8 = vweird.f32 %v1191_v33  ;;  %v580_v16 = vld [vmem:[%s1199_s21 + $0x58] sm:$0xff] }
  0xd5   : > { %v961_v55 = vpop.eup %960  ;;  %v1346_v59 = vadd.f32 1e-05, %v414_v45  ;;  %v540_v14 = vmul.f32 %v1340_v30, %v1286_v50  ;;  %661 = vperm.xlu1 %935, %v1348_v49   ;;  %vm1388_vm9 = vmor %vm485_vm8, %vm486_vm6  ;;  %v503_v42 = vsub.f32 1.5, %v502_v23  ;;  %vm555_vm11 = vweird.f32 %v1288_v56 }
  0xd6   : > { %v1351_v25 = vpop.eup %962  ;;  %v550_v36 = vmul.f32 %v961_v55, %v1288_v56  ;;  %v524_v15 = vmul.f32 %v1299_v37, %v523_v43  ;;  %656 = vperm.xlu2 %936, %v1360_v20   ;;  %v575_v43 = vld [vmem:[%s1199_s21 + $0x30] sm:$0xff]  ;;  %vm556_vm10 = vweird.f32 %v961_v55  ;;  %vm516_vm12 = vweird.f32 %v1284_v19 }
  0xd7   : > { %v530_v10 = vmul.f32 %v1351_v25, %v1303_v26  ;;  %964 = vrsqrt.f32 %v1346_v59  ;;  %v541_v45 = vmul.f32 %v1340_v30, %v540_v14  ;;  %vm557_vm13 = vmor %vm555_vm11, %vm556_vm10  ;;  %vm515_vm14 = vweird.f32 %v1246_v5 }
  0xd8   : > { %v551_v62 = vmul.f32 %v961_v55, %v550_v36  ;;  %v528_v21 = vsel %vm527_vm5, %v1299_v37, %v524_v15  ;;  %v498_v37 = vsel %vm1375_vm7, %v1251_v38, %v494_v9  ;;  %v488_v38 = vsel %vm1388_vm9, %v1239_v48, %v484_v34  ;;  %v581_v15 = vld [vmem:[%s1199_s21 + $0x60] sm:$0xff]  ;;  %vm517_vm15 = vmor %vm515_vm14, %vm516_vm12 }
  0xd9   : > { %v1371_v4 = vmul.f32 %v578_v61, %v528_v21  ;;  %v531_v40 = vmul.f32 %v1351_v25, %v530_v10  ;;  %v1397_v9 = vmul.f32 %v575_v43, %v498_v37  ;;  %v542_v14 = vmul.f32 0.5, %v541_v45  ;;  %v576_v43 = vld [vmem:[%s1199_s21 + $0x38] sm:$0xff] }
  0xda   : > { %v552_v35 = vmul.f32 0.5, %v551_v62  ;;  %v514_v61 = vmul.f32 %v1284_v19, %v513_v17  ;;  %v1406_v48 = vmul.f32 %v574_v58, %v488_v38  ;;  %v504_v23 = vmul.f32 %v1309_v53, %v503_v42  ;;  %v579_v58 = vld [vmem:[%s1199_s21 + $0x50] sm:$0xff] }
  0xdb   : > { %686 = vperm.xlu0 %937, %v1371_v4   ;;  %v532_v56 = vmul.f32 0.5, %v531_v40  ;;  %vm506_vm1 = vweird.f32 %v1309_v53  ;;  %v543_v34 = vsub.f32 1.5, %v542_v14  ;;  %vm505_vm2 = vweird.f32 %v1254_v31 }
  0xdc   : > { %v553_v57 = vsub.f32 1.5, %v552_v35  ;;  %v518_v5 = vsel %vm517_vm15, %v1284_v19, %v514_v61  ;;  %vm507_vm3 = vmor %vm505_vm2, %vm506_vm1  ;;  %v598_v19 = vld [vmem:[%s1430_s24 + $0x8] sm:$0xff]  ;;  %vm546_vm4 = vweird.f32 %v1340_v30  ;;  %vm545_vm5 = vweird.f32 %v1286_v50 }
  0xdd   : > { %v1399_v33 = vpop.eup %964  ;;  %671 = vperm.xlu1 %935, %v1397_v9   ;;  %v533_v17 = vsub.f32 1.5, %v532_v56  ;;  %v1422_v35 = vmul.f32 %v577_v46, %v518_v5  ;;  %v508_v37 = vsel %vm507_vm3, %v1309_v53, %v504_v23  ;;  %v544_v31 = vmul.f32 %v1340_v30, %v543_v34  ;;  %vm547_vm6 = vmor %vm545_vm5, %vm546_vm4  ;;  %v582_v56 = vld [vmem:[%s1199_s21 + $0x68] sm:$0xff]  ;;  %v599_v5 = vld [vmem:[%s1430_s24 + $0x10] sm:$0xff] }
  0xde   : > { %v554_v36 = vmul.f32 %v961_v55, %v553_v57  ;;  %v560_v10 = vmul.f32 %v1399_v33, %v1346_v59  ;;  %666 = vperm.xlu2 %936, %v1406_v48   ;;  %vm536_vm7 = vweird.f32 %v1351_v25  ;;  %vm535_vm8 = vweird.f32 %v1303_v26  ;;  %v607_v46 = vld [vmem:[%s1430_s24 + $0x50] sm:$0xff] }
  0xdf   : > { %v534_v57 = vmul.f32 %v1351_v25, %v533_v17  ;;  %v548_v40 = vsel %vm547_vm6, %v1340_v30, %v544_v31  ;;  %vm537_vm9 = vmor %vm535_vm8, %vm536_vm7  ;;  %v615_v14 = vmul.f32 %v1348_v49, %v1158_v47  ;;  %v611_v30 = vmul.f32 %v1235_v22, %v1125_v11  ;;  %v604_v22 = vld [vmem:[%s1430_s24 + $0x38] sm:$0xff]  ;;  %v603_v17 = vld [vmem:[%s1430_s24 + $0x30] sm:$0xff] }
  0xe0   : > { %v558_v62 = vsel %vm557_vm13, %v961_v55, %v554_v36  ;;  %v612_v55 = vmul.f32 %v1322_v60, %v1139_v29  ;;  %v561_v45 = vmul.f32 %v1399_v33, %v560_v10  ;;  %v590_v29 = vmul.f32 %v576_v43, %v508_v37  ;;  %v601_v36 = vld [vmem:[%s1430_s24 + $0x20] sm:$0xff] }
  0xe1   : > { %v1410_v21 = vmul.f32 %v581_v15, %v558_v62  ;;  %v594_v42 = vmul.f32 %v580_v16, %v548_v40  ;;  %v538_v38 = vsel %vm537_vm9, %v1351_v25, %v534_v57  ;;  %v629_v26 = vsub.f32 %v601_v36, %v615_v14  ;;  %v597_v25 = vld [vmem:[%s1430_s24] sm:$0xff] }
  0xe2   : > { %v562_v53 = vmul.f32 0.5, %v561_v45  ;;  %v626_v60 = vsub.f32 %v598_v19, %v612_v55  ;;  %v593_v15 = vmul.f32 %v579_v58, %v538_v38  ;;  %vm566_vm10 = vweird.f32 %v1399_v33  ;;  %v602_v45 = vld [vmem:[%s1430_s24 + $0x28] sm:$0xff] }
  0xe3   : > { %701 = vperm.xlu0 %937, %v1410_v21   ;;  %vm565_vm11 = vweird.f32 %v1346_v59  ;;  %v625_v47 = vsub.f32 %v597_v25, %v611_v30  ;;  %v618_v11 = vmul.f32 %v590_v29, %v1169_v52  ;;  %v614_v10 = vmul.f32 %v1360_v20, %v1135_v27  ;;  %v600_v59 = vld [vmem:[%s1430_s24 + $0x18] sm:$0xff]  ;;  %v606_v19 = vld [vmem:[%s1430_s24 + $0x48] sm:$0xff] }
  0xe4   : > { %v563_v50 = vsub.f32 1.5, %v562_v53  ;;  %vm567_vm12 = vmor %vm565_vm11, %vm566_vm10  ;;  %v613_v34 = vmul.f32 %v1280_v28, %v1133_v24  ;;  %v621_v52 = vmul.f32 %v593_v15, %v1189_v32  ;;  %v617_v27 = vmul.f32 %v1397_v9, %v1152_v44  ;;  %v610_v32 = vld [vmem:[%s1430_s24 + $0x68] sm:$0xff]  ;;  %v609_v53 = vld [vmem:[%s1430_s24 + $0x60] sm:$0xff] }
  0xe5   : > { %681 = vperm.xlu1 %935, %v1422_v35   ;;  %v632_v23 = vsub.f32 %v604_v22, %v618_v11  ;;  %v616_v24 = vmul.f32 %v1406_v48, %v1148_v39  ;;  %v620_v44 = vmul.f32 %v1371_v4, %v1180_v3  ;;  %v619_v31 = vmul.f32 %v1422_v35, %v1167_v51  ;;  %v605_v48 = vld [vmem:[%s1430_s24 + $0x40] sm:$0xff]  ;;  %v608_v3 = vld [vmem:[%s1430_s24 + $0x58] sm:$0xff] }
  0xe6   : > { %676 = vperm.xlu2 %936, %v590_v29   ;;  %v564_v61 = vmul.f32 %v1399_v33, %v563_v50  ;;  %v627_v55 = vsub.f32 %v599_v5, %v613_v34  ;;  %v635_v20 = vsub.f32 %v607_v46, %v621_v52  ;;  %v631_v28 = vsub.f32 %v603_v17, %v617_v27 }
  0xe7   : > { %v630_v43 = vsub.f32 %v602_v45, %v616_v24  ;;  %v634_v39 = vsub.f32 %v606_v19, %v620_v44  ;;  %v633_v29 = vsub.f32 %v605_v48, %v619_v31 }
  0xe8   : > { %v568_v49 = vsel %vm567_vm12, %v1399_v33, %v564_v61  ;;  %v628_v33 = vsub.f32 %v600_v59, %v614_v10 }
  0xe9   : > { %v596_v62 = vmul.f32 %v582_v56, %v568_v49 }
  0xeb   : > { %730 = vperm.xlu0 %937, %v626_v60   ;;  %v624_v37 = vmul.f32 %v596_v62, %v1242_v41  ;;  %v623_v41 = vmul.f32 %v1410_v21, %v1227_v54  ;;  %v622_v60 = vmul.f32 %v594_v42, %v1178_v63 }
  0xed   : > { %696 = vperm.xlu1 %935, %v594_v42   ;;  %v638_v9 = vsub.f32 %v610_v32, %v624_v37  ;;  %v637_v57 = vsub.f32 %v609_v53, %v623_v41  ;;  %v636_v4 = vsub.f32 %v608_v3, %v622_v60  ;;  %v1565_v53 = vld [vmem:[#allocation5_spill] sm:$0xff] }
  0xee   : > { %691 = vperm.xlu2 %936, %v593_v15  }
  0xf3   : > { %745 = vperm.xlu0 %937, %v629_v26  }
  0xf5   : > { %725 = vperm.xlu1 %935, %v625_v47  }
  0xf6   : > { %706 = vperm.xlu2 %936, %v596_v62  }
  0xfb   : > { %760 = vperm.xlu0 %937, %v632_v23  }
  0xfd   : > { %740 = vperm.xlu1 %935, %v628_v33  }
  0xfe   : > { %735 = vperm.xlu2 %936, %v627_v55  }
 0x103   : > { %775 = vperm.xlu0 %937, %v635_v20  }
 0x105   : > { %755 = vperm.xlu1 %935, %v631_v28  }
 0x106   : > { %750 = vperm.xlu2 %936, %v630_v43  }
 0x10b   : > { %790 = vperm.xlu0 %937, %v638_v9  }
 0x10d   : > { %770 = vperm.xlu1 %935, %v634_v39   ;;  %v1564_v39 = vld [vmem:[#allocation2_spill] sm:$0xff] }
 0x10e   : > { %765 = vperm.xlu2 %936, %v633_v29  }
 0x115   : > { %785 = vperm.xlu1 %935, %v637_v57  }
 0x116   : > { %780 = vperm.xlu2 %936, %v636_v4  }
 0x128   : > { %v647_v40 = vpop.permute.xlu2 %646 }
 0x129   : > { %v710_v30 = vmul.f32 %v647_v40, %v1033_v8  ;;  %v1566_v40 = vld [vmem:[#allocation4_spill] sm:$0xff] }
 0x130   : > { %v657_v16 = vpop.permute.xlu2 %656 }
 0x131   : > { %v712_v24 = vmul.f32 %v657_v16, %v1030_v7 }
 0x135   : > { %v642_v51 = vpop.permute.xlu1 %641 }
 0x136   : > { %v709_v34 = vmul.f32 %v642_v51, %v1018_v2 }
 0x138   : > { %v667_v50 = vpop.permute.xlu2 %666 }
 0x139   : > { %v714_v8 = vmul.f32 %v667_v50, %v1027_v6 }
 0x13d   : > { %v652_v38 = vpop.permute.xlu0 %651 }
 0x13e   : > { %v711_v42 = vmul.f32 %v652_v38, %v1015_v1 }
 0x140   : > { %v677_v35 = vpop.permute.xlu2 %676 }
 0x147   : > { %v662_v58 = vpop.permute.xlu1 %661 }
 0x148   : > { %v692_v14 = vpop.permute.xlu2 %691  ;;  %v713_v11 = vmul.f32 %v662_v58, %v1012_v0  ;;  %v716_v0 = vmul.f32 %v677_v35, %v1045_v13  ;;  %v1563_v13 = vld [vmem:[#allocation3_spill] sm:$0xff]  ;;  %v1567_v58 = vld [vmem:[#allocation6_spill] sm:$0xff] }
 0x149   : > { %v719_v32 = vmul.f32 %v692_v14, %v1563_v13 }
 0x14d   : > { %v1484_v36 = vpop.permute.xlu0 %686 }
 0x14e   : > { %v718_v16 = vmul.f32 %v1484_v36, %v1566_v40 }
 0x14f   : > { %v672_v54 = vpop.permute.xlu1 %671 }
 0x150   : > { %v707_v21 = vpop.permute.xlu2 %706  ;;  %v715_v48 = vmul.f32 %v672_v54, %v1564_v39 }
 0x151   : > { %v722_v60 = vmul.f32 %v707_v21, %v1565_v53 }
 0x155   : > { %v1486_v15 = vpop.permute.xlu0 %701 }
 0x156   : > { %v721_v14 = vmul.f32 %v1486_v15, %v1567_v58 }
 0x157   : > { %v682_v63 = vpop.permute.xlu1 %681 }
 0x158   : > { %v736_v26 = vpop.permute.xlu2 %735  ;;  %v717_v6 = vmul.f32 %v682_v63, %v1042_v12 }
 0x159   : > { %v795_v61 = vadd.f32 %v736_v26, %v711_v42 }
 0x15b   : > { %v809_v49 = vmax.f32 %v795_v61, 0.0 }
 0x15d   : > { %v731_v25 = vpop.permute.xlu0 %730  ;;  %823 = vst.msk [vmem:[%s1494_s27 + $0x10] sm:$0xff] %vm232_vm0, %v809_v49 }
 0x15e   : > { %v794_v47 = vadd.f32 %v731_v25, %v710_v30 }
 0x15f   : > { %v697_v1 = vpop.permute.xlu1 %696 }
 0x160   : > { %v808_v56 = vmax.f32 %v794_v47, 0.0  ;;  %v751_v22 = vpop.permute.xlu2 %750  ;;  %v720_v12 = vmul.f32 %v697_v1, %v1057_v18 }
 0x161   : > { %v798_v62 = vadd.f32 %v751_v22, %v714_v8 }
 0x162   : > { %822 = vst.msk [vmem:[%s1494_s27 + $0x8] sm:$0xff] %vm232_vm0, %v808_v56 }
 0x163   : > { %v812_v59 = vmax.f32 %v798_v62, 0.0 }
 0x165   : > { %v746_v10 = vpop.permute.xlu0 %745  ;;  %826 = vst.msk [vmem:[%s1494_s27 + $0x28] sm:$0xff] %vm232_vm0, %v812_v59 }
 0x166   : > { %v797_v23 = vadd.f32 %v746_v10, %v713_v11 }
 0x167   : > { %v726_v5 = vpop.permute.xlu1 %725 }
 0x168   : > { %v811_v33 = vmax.f32 %v797_v23, 0.0  ;;  %v793_v52 = vadd.f32 %v726_v5, %v709_v34  ;;  %v766_v55 = vpop.permute.xlu2 %765 }
 0x169   : > { %v801_v27 = vadd.f32 %v766_v55, %v717_v6 }
 0x16a   : > { %825 = vst.msk [vmem:[%s1494_s27 + $0x20] sm:$0xff] %vm232_vm0, %v811_v33  ;;  %v807_v46 = vmax.f32 %v793_v52, 0.0 }
 0x16b   : > { %v815_v17 = vmax.f32 %v801_v27, 0.0 }
 0x16c   : > { %821 = vst.msk [vmem:[%s1494_s27] sm:$0xff] %vm232_vm0, %v807_v46 }
 0x16d   : > { %v761_v20 = vpop.permute.xlu0 %760  ;;  %829 = vst.msk [vmem:[%s1494_s27 + $0x40] sm:$0xff] %vm232_vm0, %v815_v17 }
 0x16e   : > { %v800_v2 = vadd.f32 %v761_v20, %v716_v0 }
 0x16f   : > { %v741_v45 = vpop.permute.xlu1 %740 }
 0x170   : > { %v814_v28 = vmax.f32 %v800_v2, 0.0  ;;  %v796_v37 = vadd.f32 %v741_v45, %v712_v24  ;;  %v781_v44 = vpop.permute.xlu2 %780 }
 0x171   : > { %v804_v9 = vadd.f32 %v781_v44, %v720_v12 }
 0x172   : > { %828 = vst.msk [vmem:[%s1494_s27 + $0x38] sm:$0xff] %vm232_vm0, %v814_v28  ;;  %v810_v43 = vmax.f32 %v796_v37, 0.0 }
 0x173   : > { %v818_v31 = vmax.f32 %v804_v9, 0.0 }
 0x174   : > { %824 = vst.msk [vmem:[%s1494_s27 + $0x18] sm:$0xff] %vm232_vm0, %v810_v43 }
 0x175   : > { %v776_v19 = vpop.permute.xlu0 %775  ;;  %832 = vst.msk [vmem:[%s1494_s27 + $0x58] sm:$0xff] %vm232_vm0, %v818_v31 }
 0x176   : > { %v803_v7 = vadd.f32 %v776_v19, %v719_v32 }
 0x177   : > { %v756_v41 = vpop.permute.xlu1 %755 }
 0x178   : > { %v817_v29 = vmax.f32 %v803_v7, 0.0  ;;  %v799_v18 = vadd.f32 %v756_v41, %v715_v48 }
 0x17a   : > { %831 = vst.msk [vmem:[%s1494_s27 + $0x50] sm:$0xff] %vm232_vm0, %v817_v29  ;;  %v813_v57 = vmax.f32 %v799_v18, 0.0 }
 0x17c   : > { %827 = vst.msk [vmem:[%s1494_s27 + $0x30] sm:$0xff] %vm232_vm0, %v813_v57 }
 0x17d   : > { %v791_v3 = vpop.permute.xlu0 %790 }
 0x17e   : > { %v806_v4 = vadd.f32 %v791_v3, %v722_v60 }
 0x17f   : > { %v771_v51 = vpop.permute.xlu1 %770 }
 0x180   : > { %v820_v50 = vmax.f32 %v806_v4, 0.0  ;;  %v802_v35 = vadd.f32 %v771_v51, %v718_v16 }
 0x182   : > { %834 = vst.msk [vmem:[%s1494_s27 + $0x68] sm:$0xff] %vm232_vm0, %v820_v50  ;;  %v816_v38 = vmax.f32 %v802_v35, 0.0 }
 0x184   : > { %830 = vst.msk [vmem:[%s1494_s27 + $0x48] sm:$0xff] %vm232_vm0, %v816_v38 }
 0x187   : > { %v786_v54 = vpop.permute.xlu1 %785 }
 0x188   : > { %v805_v21 = vadd.f32 %v786_v54, %v721_v14 }
 0x18a   : > { %v819_v63 = vmax.f32 %v805_v21, 0.0 }
 0x18c   : > { %833 = vst.msk [vmem:[%s1494_s27 + $0x60] sm:$0xff] %vm232_vm0, %v819_v63 }
 0x18d PF: > { %s13_s12 = sadd.s32 1, %s972_s12  }
 0x18e   : > { %p10_p4 = scmp.ge.s32.totalorder %s13_s12, 9  }
 0x190   :  { %12 = sbr.rel (!%p10_p4) target bundleno = 1 (0x1), region = 68 }

</bundles_post_ra>
